<compile_context>
chip_gen: v5e
topology: v5e:2x2
jax: 0.10.0
libtpu: 0.0.40
codegen_flags: <defaults>
</compile_context>

<pallas_src>
import functools
import math

import jax
import jax.numpy as jnp
from jax.experimental import pallas as pl
from jax.experimental.pallas import tpu as pltpu

LN_EPS = 1e-5                           # torch.nn.LayerNorm default
_SQRT_2_OVER_PI = math.sqrt(2.0 / math.pi)
_INV_SQRT_2 = 1.0 / math.sqrt(2.0)


def _round_up(n, m):
    return -(-n // m) * m


def _gelu(x, approximate):
    if approximate:
        # tanh approximation (torch.nn.GELU(approximate='tanh')); tanh is an
        # EUP op, so the VALU-heavy erf polynomial is avoided.
        inner = _SQRT_2_OVER_PI * (x + 0.044715 * (x * x * x))
        return 0.5 * x * (1.0 + jnp.tanh(inner))
    # exact erf formulation == torch.nn.GELU() default
    return 0.5 * x * (1.0 + jax.lax.erf(x * _INV_SQRT_2))


def _layernorm(x, gamma, beta):
    mu = jnp.mean(x, axis=-1, keepdims=True)
    centered = x - mu
    var = jnp.mean(centered * centered, axis=-1, keepdims=True)
    return centered * jax.lax.rsqrt(var + LN_EPS) * gamma + beta


def qnetwork_kernel(
    x_ref,
    ln1_g_ref, ln1_b_ref,
    w1_ref, b1_ref,
    ln2_g_ref, ln2_b_ref,
    w2_ref, b2_ref,
    w3_ref, b3_ref,
    out_ref,
    *, gelu_approximate,
):
    x = x_ref[...].astype(jnp.float32)

    # input_norm (over the true state_dim lanes; no padding, no mask needed)
    x = _layernorm(x, ln1_g_ref[...], ln1_b_ref[...])

    # state_to_hidden_proj + GELU
    h = jnp.dot(x, w1_ref[...], preferred_element_type=jnp.float32) + b1_ref[...]
    h = _gelu(h, gelu_approximate)

    # norm2
    h = _layernorm(h, ln2_g_ref[...], ln2_b_ref[...])

    # middle_layer + GELU
    h = jnp.dot(h, w2_ref[...], preferred_element_type=jnp.float32) + b2_ref[...]
    h = _gelu(h, gelu_approximate)

    # hidden_to_v_proj (narrow (tm, action_num) store; no wrapper slice pass)
    out = jnp.dot(h, w3_ref[...], preferred_element_type=jnp.float32) + b3_ref[...]
    out_ref[...] = out.astype(out_ref.dtype)


def _choose_tile(batch, tm_max):
    """Nearly-even, 8-row-aligned batch tiles; >=2 grid steps when the batch
    allows, so both v7x TensorCores get work with a "parallel" batch axis."""
    n_tiles = pl.cdiv(batch, tm_max)
    if batch > 8:
        n_tiles = max(n_tiles, 2)
    return _round_up(pl.cdiv(batch, n_tiles), 8)


def qnetwork_forward(x, params, *, tm=4096, gelu_approximate=True):
    """x: (B, state_dim) float32 -> (B, action_num) float32."""
    B, state_dim = x.shape
    hidden_dim = params["w1"].shape[1]
    action_num = params["w3"].shape[1]
    assert params["w1"].shape[0] == state_dim

    tm = _choose_tile(B, tm)
    b_pad = _round_up(B, tm)
    grid = (b_pad // tm,)

    x_p = x.astype(jnp.float32)
    if b_pad != B:
        x_p = jnp.pad(x_p, ((0, b_pad - B), (0, 0)))   # pad rows only

    kernel = functools.partial(qnetwork_kernel, gelu_approximate=gelu_approximate)

    args = (
        x_p,
        params["ln1_g"], params["ln1_b"],
        params["w1"], params["b1"],
        params["ln2_g"], params["ln2_b"],
        params["w2"], params["b2"],
        params["w3"], params["b3"],
    )

    x_spec = pl.BlockSpec((tm, state_dim), lambda i: (i, 0))
    out_spec = pl.BlockSpec((tm, action_num), lambda i: (i, 0))

    def resident(p):
        # Full-array block, same block index every step -> fetched once and
        # kept VMEM-resident across the whole grid.
        return pl.BlockSpec(p.shape, lambda i: (0, 0))

    in_specs = [x_spec] + [resident(a) for a in args[1:]]

    flops = 2 * b_pad * (state_dim * hidden_dim
                         + hidden_dim * hidden_dim
                         + hidden_dim * action_num)
    transcendentals = 2 * b_pad * hidden_dim            # two GELUs
    bytes_accessed = (x_p.size + b_pad * action_num) * 4 + sum(
        int(a.size) * a.dtype.itemsize for a in args[1:])

    out = pl.pallas_call(
        kernel,
        out_shape=jax.ShapeDtypeStruct((b_pad, action_num), jnp.float32),
        grid=grid,
        in_specs=in_specs,
        out_specs=out_spec,
        compiler_params=pltpu.CompilerParams(
            dimension_semantics=("parallel",)),
        cost_estimate=pl.CostEstimate(
            flops=flops,
            transcendentals=transcendentals,
            bytes_accessed=bytes_accessed),
    )(*args)

    return out if b_pad == B else out[:B]


def init_params(key, state_dim, action_num, hidden_dim=64):
    """Synthetic init matching the PyTorch module's shapes.  Linear weights
    are stored transposed vs PyTorch, i.e. (in, out); no padding anywhere.
    LayerNorm: weight=1, bias=0 (torch default init)."""
    ks = jax.random.split(key, 6)

    def lin(kw, kb, fan_in, fan_out):
        bound = 1.0 / math.sqrt(fan_in)
        w = jax.random.uniform(kw, (fan_in, fan_out), jnp.float32, -bound, bound)
        b = jax.random.uniform(kb, (1, fan_out), jnp.float32, -bound, bound)
        return w, b

    w1, b1 = lin(ks[0], ks[1], state_dim, hidden_dim)
    w2, b2 = lin(ks[2], ks[3], hidden_dim, hidden_dim)
    w3, b3 = lin(ks[4], ks[5], hidden_dim, action_num)

    return {
        "ln1_g": jnp.ones((1, state_dim), jnp.float32),
        "ln1_b": jnp.zeros((1, state_dim), jnp.float32),
        "w1": w1, "b1": b1,
        "ln2_g": jnp.ones((1, hidden_dim), jnp.float32),
        "ln2_b": jnp.zeros((1, hidden_dim), jnp.float32),
        "w2": w2, "b2": b2,
        "w3": w3, "b3": b3,
    }


def _reference(x, p, gelu_approximate):
    """Pure-JAX reference of the same forward pass (f32, HIGHEST precision)."""
    dot = functools.partial(jnp.dot, precision=jax.lax.Precision.HIGHEST,
                            preferred_element_type=jnp.float32)
    h = _layernorm(x, p["ln1_g"], p["ln1_b"])
    h = _gelu(dot(h, p["w1"]) + p["b1"], gelu_approximate)
    h = _layernorm(h, p["ln2_g"], p["ln2_b"])
    h = _gelu(dot(h, p["w2"]) + p["b2"], gelu_approximate)
    return dot(h, p["w3"]) + p["b3"]


if __name__ == "__main__":
    B, STATE_DIM, ACTION_NUM, HIDDEN = 8, 32, 8, 64

    key = jax.random.PRNGKey(0)
    k_x, k_p = jax.random.split(key)
    x = jax.random.normal(k_x, (B, STATE_DIM), jnp.float32)
    params = init_params(k_p, STATE_DIM, ACTION_NUM, HIDDEN)

    # Default (fast) path: tanh GELU on the EUP.
    out = jax.block_until_ready(qnetwork_forward(x, params))
    ref = _reference(x, params, gelu_approximate=True)
    assert out.shape == (B, ACTION_NUM)
    assert jnp.allclose(out, ref, atol=1e-4, rtol=1e-4), float(
        jnp.max(jnp.abs(out - ref)))

    # Exact-erf path: parity with torch.nn.GELU() default.
    out_exact = jax.block_until_ready(
        qnetwork_forward(x, params, gelu_approximate=False))
    ref_exact = _reference(x, params, gelu_approximate=False)
    assert jnp.allclose(out_exact, ref_exact, atol=1e-4, rtol=1e-4), float(
        jnp.max(jnp.abs(out_exact - ref_exact)))

    print("KERNEL_OK")
</pallas_src>

<mosaic_0001>
module attributes {stable_mosaic.version = 11 : i64} {
  func.func @qnetwork_kernel(%arg0: i32, %arg1: memref<8x32xf32, #tpu.memory_space<vmem>>, %arg2: memref<1x32xf32, #tpu.memory_space<vmem>>, %arg3: memref<1x32xf32, #tpu.memory_space<vmem>>, %arg4: memref<32x64xf32, #tpu.memory_space<vmem>>, %arg5: memref<1x64xf32, #tpu.memory_space<vmem>>, %arg6: memref<1x64xf32, #tpu.memory_space<vmem>>, %arg7: memref<1x64xf32, #tpu.memory_space<vmem>>, %arg8: memref<64x64xf32, #tpu.memory_space<vmem>>, %arg9: memref<1x64xf32, #tpu.memory_space<vmem>>, %arg10: memref<64x8xf32, #tpu.memory_space<vmem>>, %arg11: memref<1x8xf32, #tpu.memory_space<vmem>>, %arg12: memref<8x8xf32, #tpu.memory_space<vmem>>) attributes {dimension_semantics = [#tpu.dimension_semantics<parallel>], iteration_bounds = array<i64: 1>, scalar_prefetch = 0 : i64, scratch_operands = 0 : i64, tpu.core_type = #tpu.core_type<tc>, window_params = [{transform_indices = @transform_0, window_bounds = array<i64: 8, 32>}, {pipeline_mode = #tpu.pipeline_mode<synchronous>, transform_indices = @transform_1, window_bounds = array<i64: 1, 32>}, {pipeline_mode = #tpu.pipeline_mode<synchronous>, transform_indices = @transform_2, window_bounds = array<i64: 1, 32>}, {pipeline_mode = #tpu.pipeline_mode<synchronous>, transform_indices = @transform_3, window_bounds = array<i64: 32, 64>}, {pipeline_mode = #tpu.pipeline_mode<synchronous>, transform_indices = @transform_4, window_bounds = array<i64: 1, 64>}, {pipeline_mode = #tpu.pipeline_mode<synchronous>, transform_indices = @transform_5, window_bounds = array<i64: 1, 64>}, {pipeline_mode = #tpu.pipeline_mode<synchronous>, transform_indices = @transform_6, window_bounds = array<i64: 1, 64>}, {pipeline_mode = #tpu.pipeline_mode<synchronous>, transform_indices = @transform_7, window_bounds = array<i64: 64, 64>}, {pipeline_mode = #tpu.pipeline_mode<synchronous>, transform_indices = @transform_8, window_bounds = array<i64: 1, 64>}, {pipeline_mode = #tpu.pipeline_mode<synchronous>, transform_indices = @transform_9, window_bounds = array<i64: 64, 8>}, {pipeline_mode = #tpu.pipeline_mode<synchronous>, transform_indices = @transform_10, window_bounds = array<i64: 1, 8>}, {transform_indices = @transform_11, window_bounds = array<i64: 8, 8>}]} {
    %c0 = arith.constant 0 : index
    %c0_0 = arith.constant 0 : index
    %0 = vector.load %arg1[%c0, %c0_0] : memref<8x32xf32, #tpu.memory_space<vmem>>, vector<8x32xf32>
    %c0_1 = arith.constant 0 : index
    %c0_2 = arith.constant 0 : index
    %1 = vector.load %arg2[%c0_1, %c0_2] : memref<1x32xf32, #tpu.memory_space<vmem>>, vector<1x32xf32>
    %c0_3 = arith.constant 0 : index
    %c0_4 = arith.constant 0 : index
    %2 = vector.load %arg3[%c0_3, %c0_4] : memref<1x32xf32, #tpu.memory_space<vmem>>, vector<1x32xf32>
    %cst = arith.constant dense<0.000000e+00> : vector<8xf32>
    %3 = vector.multi_reduction <add>, %0, %cst [1] : vector<8x32xf32> to vector<8xf32>
    %4 = vector.shape_cast %3 : vector<8xf32> to vector<8x1xf32>
    %cst_5 = arith.constant 3.200000e+01 : f32
    %5 = vector.broadcast %cst_5 : f32 to vector<8x1xf32>
    %6 = arith.divf %4, %5 : vector<8x1xf32>
    %7 = vector.broadcast %6 : vector<8x1xf32> to vector<8x32xf32>
    %8 = arith.subf %0, %7 : vector<8x32xf32>
    %9 = arith.mulf %8, %8 : vector<8x32xf32>
    %cst_6 = arith.constant dense<0.000000e+00> : vector<8xf32>
    %10 = vector.multi_reduction <add>, %9, %cst_6 [1] : vector<8x32xf32> to vector<8xf32>
    %11 = vector.shape_cast %10 : vector<8xf32> to vector<8x1xf32>
    %cst_7 = arith.constant 3.200000e+01 : f32
    %12 = vector.broadcast %cst_7 : f32 to vector<8x1xf32>
    %13 = arith.divf %11, %12 : vector<8x1xf32>
    %cst_8 = arith.constant 9.99999974E-6 : f32
    %14 = vector.broadcast %cst_8 : f32 to vector<8x1xf32>
    %15 = arith.addf %13, %14 : vector<8x1xf32>
    %16 = math.rsqrt %15 : vector<8x1xf32>
    %17 = vector.broadcast %16 : vector<8x1xf32> to vector<8x32xf32>
    %18 = arith.mulf %8, %17 : vector<8x32xf32>
    %19 = vector.broadcast %1 : vector<1x32xf32> to vector<8x32xf32>
    %20 = arith.mulf %18, %19 : vector<8x32xf32>
    %21 = vector.broadcast %2 : vector<1x32xf32> to vector<8x32xf32>
    %22 = arith.addf %20, %21 : vector<8x32xf32>
    %c0_9 = arith.constant 0 : index
    %c0_10 = arith.constant 0 : index
    %23 = vector.load %arg4[%c0_9, %c0_10] : memref<32x64xf32, #tpu.memory_space<vmem>>, vector<32x64xf32>
    %cst_11 = arith.constant dense<0.000000e+00> : vector<8x64xf32>
    %24 = tpu.matmul %22, %23, %cst_11 {dimension_numbers = #tpu.dot_dimension_numbers<[1], [0], [0], [1], [0, 0, 1, 1], [], []>} : vector<8x32xf32>, vector<32x64xf32>, vector<8x64xf32> -> vector<8x64xf32>
    %c0_12 = arith.constant 0 : index
    %c0_13 = arith.constant 0 : index
    %25 = vector.load %arg5[%c0_12, %c0_13] : memref<1x64xf32, #tpu.memory_space<vmem>>, vector<1x64xf32>
    %26 = vector.broadcast %25 : vector<1x64xf32> to vector<8x64xf32>
    %27 = arith.addf %24, %26 : vector<8x64xf32>
    %28 = arith.mulf %27, %27 : vector<8x64xf32>
    %29 = arith.mulf %28, %27 : vector<8x64xf32>
    %cst_14 = arith.constant 4.471500e-02 : f32
    %30 = vector.broadcast %cst_14 : f32 to vector<8x64xf32>
    %31 = arith.mulf %30, %29 : vector<8x64xf32>
    %32 = arith.addf %27, %31 : vector<8x64xf32>
    %cst_15 = arith.constant 0.797884583 : f32
    %33 = vector.broadcast %cst_15 : f32 to vector<8x64xf32>
    %34 = arith.mulf %33, %32 : vector<8x64xf32>
    %cst_16 = arith.constant 5.000000e-01 : f32
    %35 = vector.broadcast %cst_16 : f32 to vector<8x64xf32>
    %36 = arith.mulf %35, %27 : vector<8x64xf32>
    %37 = math.tanh %34 : vector<8x64xf32>
    %cst_17 = arith.constant 1.000000e+00 : f32
    %38 = vector.broadcast %cst_17 : f32 to vector<8x64xf32>
    %39 = arith.addf %38, %37 : vector<8x64xf32>
    %40 = arith.mulf %36, %39 : vector<8x64xf32>
    %c0_18 = arith.constant 0 : index
    %c0_19 = arith.constant 0 : index
    %41 = vector.load %arg6[%c0_18, %c0_19] : memref<1x64xf32, #tpu.memory_space<vmem>>, vector<1x64xf32>
    %c0_20 = arith.constant 0 : index
    %c0_21 = arith.constant 0 : index
    %42 = vector.load %arg7[%c0_20, %c0_21] : memref<1x64xf32, #tpu.memory_space<vmem>>, vector<1x64xf32>
    %cst_22 = arith.constant dense<0.000000e+00> : vector<8xf32>
    %43 = vector.multi_reduction <add>, %40, %cst_22 [1] : vector<8x64xf32> to vector<8xf32>
    %44 = vector.shape_cast %43 : vector<8xf32> to vector<8x1xf32>
    %cst_23 = arith.constant 6.400000e+01 : f32
    %45 = vector.broadcast %cst_23 : f32 to vector<8x1xf32>
    %46 = arith.divf %44, %45 : vector<8x1xf32>
    %47 = vector.broadcast %46 : vector<8x1xf32> to vector<8x64xf32>
    %48 = arith.subf %40, %47 : vector<8x64xf32>
    %49 = arith.mulf %48, %48 : vector<8x64xf32>
    %cst_24 = arith.constant dense<0.000000e+00> : vector<8xf32>
    %50 = vector.multi_reduction <add>, %49, %cst_24 [1] : vector<8x64xf32> to vector<8xf32>
    %51 = vector.shape_cast %50 : vector<8xf32> to vector<8x1xf32>
    %cst_25 = arith.constant 6.400000e+01 : f32
    %52 = vector.broadcast %cst_25 : f32 to vector<8x1xf32>
    %53 = arith.divf %51, %52 : vector<8x1xf32>
    %cst_26 = arith.constant 9.99999974E-6 : f32
    %54 = vector.broadcast %cst_26 : f32 to vector<8x1xf32>
    %55 = arith.addf %53, %54 : vector<8x1xf32>
    %56 = math.rsqrt %55 : vector<8x1xf32>
    %57 = vector.broadcast %56 : vector<8x1xf32> to vector<8x64xf32>
    %58 = arith.mulf %48, %57 : vector<8x64xf32>
    %59 = vector.broadcast %41 : vector<1x64xf32> to vector<8x64xf32>
    %60 = arith.mulf %58, %59 : vector<8x64xf32>
    %61 = vector.broadcast %42 : vector<1x64xf32> to vector<8x64xf32>
    %62 = arith.addf %60, %61 : vector<8x64xf32>
    %c0_27 = arith.constant 0 : index
    %c0_28 = arith.constant 0 : index
    %63 = vector.load %arg8[%c0_27, %c0_28] : memref<64x64xf32, #tpu.memory_space<vmem>>, vector<64x64xf32>
    %cst_29 = arith.constant dense<0.000000e+00> : vector<8x64xf32>
    %64 = tpu.matmul %62, %63, %cst_29 {dimension_numbers = #tpu.dot_dimension_numbers<[1], [0], [0], [1], [0, 0, 1, 1], [], []>} : vector<8x64xf32>, vector<64x64xf32>, vector<8x64xf32> -> vector<8x64xf32>
    %c0_30 = arith.constant 0 : index
    %c0_31 = arith.constant 0 : index
    %65 = vector.load %arg9[%c0_30, %c0_31] : memref<1x64xf32, #tpu.memory_space<vmem>>, vector<1x64xf32>
    %66 = vector.broadcast %65 : vector<1x64xf32> to vector<8x64xf32>
    %67 = arith.addf %64, %66 : vector<8x64xf32>
    %68 = arith.mulf %67, %67 : vector<8x64xf32>
    %69 = arith.mulf %68, %67 : vector<8x64xf32>
    %cst_32 = arith.constant 4.471500e-02 : f32
    %70 = vector.broadcast %cst_32 : f32 to vector<8x64xf32>
    %71 = arith.mulf %70, %69 : vector<8x64xf32>
    %72 = arith.addf %67, %71 : vector<8x64xf32>
    %cst_33 = arith.constant 0.797884583 : f32
    %73 = vector.broadcast %cst_33 : f32 to vector<8x64xf32>
    %74 = arith.mulf %73, %72 : vector<8x64xf32>
    %cst_34 = arith.constant 5.000000e-01 : f32
    %75 = vector.broadcast %cst_34 : f32 to vector<8x64xf32>
    %76 = arith.mulf %75, %67 : vector<8x64xf32>
    %77 = math.tanh %74 : vector<8x64xf32>
    %cst_35 = arith.constant 1.000000e+00 : f32
    %78 = vector.broadcast %cst_35 : f32 to vector<8x64xf32>
    %79 = arith.addf %78, %77 : vector<8x64xf32>
    %80 = arith.mulf %76, %79 : vector<8x64xf32>
    %c0_36 = arith.constant 0 : index
    %c0_37 = arith.constant 0 : index
    %81 = vector.load %arg10[%c0_36, %c0_37] : memref<64x8xf32, #tpu.memory_space<vmem>>, vector<64x8xf32>
    %cst_38 = arith.constant dense<0.000000e+00> : vector<8x8xf32>
    %82 = tpu.matmul %80, %81, %cst_38 {dimension_numbers = #tpu.dot_dimension_numbers<[1], [0], [0], [1], [0, 0, 1, 1], [], []>} : vector<8x64xf32>, vector<64x8xf32>, vector<8x8xf32> -> vector<8x8xf32>
    %c0_39 = arith.constant 0 : index
    %c0_40 = arith.constant 0 : index
    %83 = vector.load %arg11[%c0_39, %c0_40] : memref<1x8xf32, #tpu.memory_space<vmem>>, vector<1x8xf32>
    %84 = vector.broadcast %83 : vector<1x8xf32> to vector<8x8xf32>
    %85 = arith.addf %82, %84 : vector<8x8xf32>
    %c0_41 = arith.constant 0 : index
    %c0_42 = arith.constant 0 : index
    %86 = vector.load %arg12[%c0_41, %c0_42] : memref<8x8xf32, #tpu.memory_space<vmem>>, vector<8x8xf32>
    tpu.vector_store %arg12[%c0_41, %c0_42], %85 {strides = array<i32>} : memref<8x8xf32, #tpu.memory_space<vmem>>, vector<8x8xf32>,
    return
  }
  func.func @transform_0(%arg0: i32) -> (i32, i32) {
    %c0_i32 = arith.constant 0 : i32
    %c0_i32_0 = arith.constant 0 : i32
    return %arg0, %c0_i32 : i32, i32
  }
  func.func @transform_1(%arg0: i32) -> (i32, i32) {
    %c0_i32 = arith.constant 0 : i32
    %c0_i32_0 = arith.constant 0 : i32
    %c0_i32_1 = arith.constant 0 : i32
    return %c0_i32, %c0_i32_0 : i32, i32
  }
  func.func @transform_2(%arg0: i32) -> (i32, i32) {
    %c0_i32 = arith.constant 0 : i32
    %c0_i32_0 = arith.constant 0 : i32
    %c0_i32_1 = arith.constant 0 : i32
    return %c0_i32, %c0_i32_0 : i32, i32
  }
  func.func @transform_3(%arg0: i32) -> (i32, i32) {
    %c0_i32 = arith.constant 0 : i32
    %c0_i32_0 = arith.constant 0 : i32
    %c0_i32_1 = arith.constant 0 : i32
    return %c0_i32, %c0_i32_0 : i32, i32
  }
  func.func @transform_4(%arg0: i32) -> (i32, i32) {
    %c0_i32 = arith.constant 0 : i32
    %c0_i32_0 = arith.constant 0 : i32
    %c0_i32_1 = arith.constant 0 : i32
    return %c0_i32, %c0_i32_0 : i32, i32
  }
  func.func @transform_5(%arg0: i32) -> (i32, i32) {
    %c0_i32 = arith.constant 0 : i32
    %c0_i32_0 = arith.constant 0 : i32
    %c0_i32_1 = arith.constant 0 : i32
    return %c0_i32, %c0_i32_0 : i32, i32
  }
  func.func @transform_6(%arg0: i32) -> (i32, i32) {
    %c0_i32 = arith.constant 0 : i32
    %c0_i32_0 = arith.constant 0 : i32
    %c0_i32_1 = arith.constant 0 : i32
    return %c0_i32, %c0_i32_0 : i32, i32
  }
  func.func @transform_7(%arg0: i32) -> (i32, i32) {
    %c0_i32 = arith.constant 0 : i32
    %c0_i32_0 = arith.constant 0 : i32
    %c0_i32_1 = arith.constant 0 : i32
    return %c0_i32, %c0_i32_0 : i32, i32
  }
  func.func @transform_8(%arg0: i32) -> (i32, i32) {
    %c0_i32 = arith.constant 0 : i32
    %c0_i32_0 = arith.constant 0 : i32
    %c0_i32_1 = arith.constant 0 : i32
    return %c0_i32, %c0_i32_0 : i32, i32
  }
  func.func @transform_9(%arg0: i32) -> (i32, i32) {
    %c0_i32 = arith.constant 0 : i32
    %c0_i32_0 = arith.constant 0 : i32
    %c0_i32_1 = arith.constant 0 : i32
    return %c0_i32, %c0_i32_0 : i32, i32
  }
  func.func @transform_10(%arg0: i32) -> (i32, i32) {
    %c0_i32 = arith.constant 0 : i32
    %c0_i32_0 = arith.constant 0 : i32
    %c0_i32_1 = arith.constant 0 : i32
    return %c0_i32, %c0_i32_0 : i32, i32
  }
  func.func @transform_11(%arg0: i32) -> (i32, i32) {
    %c0_i32 = arith.constant 0 : i32
    %c0_i32_0 = arith.constant 0 : i32
    return %arg0, %c0_i32 : i32, i32
  }
}

</mosaic_0001>

<bundles_post_ra>
// kernel: tpu_custom_call.1
= control target key start
LH: loop header
LB: loop body
LE: loop exit
PB: predicated region body
PF: predicated region fallthrough
CT: control target
= control target key end

     0   :  { %16 = vsyncpa [#allocation3], 0  ;;  %s751_s0 = inlined_call_operand.vmem [shape: f32[8,32], index: 0, kind: input, shape index: {}]   ;;  %s752_s1 = inlined_call_operand.hbm [shape: f32[1,32], index: 1, kind: input, shape index: {}]   ;;  %s753_s2 = inlined_call_operand.hbm [shape: f32[1,32], index: 2, kind: input, shape index: {}]   ;;  %s754_s3 = inlined_call_operand.hbm [shape: f32[32,64], index: 3, kind: input, shape index: {}]   ;;  %s755_s4 = inlined_call_operand.hbm [shape: f32[1,64], index: 4, kind: input, shape index: {}]   ;;  %s756_s5 = inlined_call_operand.hbm [shape: f32[1,64], index: 5, kind: input, shape index: {}]   ;;  %s757_s6 = inlined_call_operand.hbm [shape: f32[1,64], index: 6, kind: input, shape index: {}]   ;;  %s758_s7 = inlined_call_operand.vmem [shape: f32[64,64], index: 7, kind: input, shape index: {}]   ;;  %s759_s8 = inlined_call_operand.hbm [shape: f32[1,64], index: 8, kind: input, shape index: {}]   ;;  %s760_s9 = inlined_call_operand.vmem [shape: f32[64,8], index: 9, kind: input, shape index: {}]   ;;  %s761_s10 = inlined_call_operand.vmem [shape: f32[1,8], index: 10, kind: input, shape index: {}]   ;;  %s762_s11 = inlined_call_operand.hbm [shape: f32[8,8], index: 11, kind: output, shape index: {}]  }
   0x1   :  { %17 = vsyncpa [#allocation6], 0 }
   0x2   :  { %18 = vsyncpa [#allocation9], 0 }
   0x3   :  { %19 = vsyncpa [#allocation12], 0  ;;  %s39_s19 = sshll.u32 %s753_s2, 4  ;;  %s40_s19 = int_to_ptr.hbm [resolvable:$true] %s39_s19 }
   0x4   :  { %20 = vsyncpa [#allocation4], 0  ;;  %s594_s20 = smov [#allocation5]   ;;  %s63_s24 = sshll.u32 %s755_s4, 4  ;;  %s64_s24 = int_to_ptr.hbm [resolvable:$true] %s63_s24 }
   0x5   :  { %s41_s21 = sshll.u32 %s594_s20, 4  ;;  %s595_s25 = smov [#allocation8]   ;;  %s42_s21 = int_to_ptr.vmem [resolvable:$true] %s41_s21 }
   0x6   :  { %44 = dma.hbm_to_vmem [thread:$0]  %s40_s19, 16, %s42_s21, [#allocation6]  }
   0x7   :  { %s65_s26 = sshll.u32 %s595_s25, 4  ;;  %s85_s29 = sshll.u32 %s757_s6, 4  ;;  %s66_s26 = int_to_ptr.vmem [resolvable:$true] %s65_s26  ;;  %s86_s29 = int_to_ptr.hbm [resolvable:$true] %s85_s29 }
   0x8   :  { %68 = dma.hbm_to_vmem [thread:$0]  %s64_s24, 16, %s66_s26, [#allocation9]  }
   0x9   :  { %s28_s12 = sshll.u32 %s752_s1, 4  ;;  %s596_s13 = smov [#allocation11]   ;;  %s29_s12 = int_to_ptr.hbm [resolvable:$true] %s28_s12 }
   0xa   :  { %s87_s14 = sshll.u32 %s596_s13, 4  ;;  %s597_s4 = smov [#allocation2]   ;;  %s88_s14 = int_to_ptr.vmem [resolvable:$true] %s87_s14 }
   0xb   :  { %90 = dma.hbm_to_vmem [thread:$0]  %s86_s29, 16, %s88_s14, [#allocation12]  }
   0xc   :  { %s30_s15 = sshll.u32 %s597_s4, 4  ;;  %s49_s18 = sshll.u32 %s754_s3, 4  ;;  %s31_s15 = int_to_ptr.vmem [resolvable:$true] %s30_s15  ;;  %s50_s18 = int_to_ptr.hbm [resolvable:$true] %s49_s18 }
   0xd   :  { %33 = dma.hbm_to_vmem [thread:$0]  %s29_s12, 16, %s31_s15, [#allocation3]  }
   0xe   :  { %s598_s6 = smov [#allocation7]   ;;  %s74_s1 = sshll.u32 %s756_s5, 4  ;;  %s75_s1 = int_to_ptr.hbm [resolvable:$true] %s74_s1 }
   0xf   :  { %s51_s19 = sshll.u32 %s598_s6, 4  ;;  %s599_s22 = smov 128   ;;  %s52_s19 = int_to_ptr.vmem [resolvable:$true] %s51_s19 }
  0x10   :  { %s600_s23 = smov 8   ;;  %s601_s24 = smov [#allocation10]  }
  0x11   :  { %57 = dma.hbm_to_vmem [thread:$0]  %s50_s18, 512, %s52_s19, [#allocation6], %s599_s22, %s599_s22, %s600_s23  }
  0x12   :  { %s76_s25 = sshll.u32 %s601_s24, 4  ;;  %s98_s3 = sshll.u32 %s759_s8, 4  ;;  %s77_s25 = int_to_ptr.vmem [resolvable:$true] %s76_s25  ;;  %s99_s3 = int_to_ptr.hbm [resolvable:$true] %s98_s3 }
  0x13   :  { %79 = dma.hbm_to_vmem [thread:$0]  %s75_s1, 16, %s77_s25, [#allocation9]  }
  0x14   :  { %s602_s28 = smov [#allocation13]  }
  0x15   :  { %s100_s29 = sshll.u32 %s602_s28, 4  ;;  %s101_s29 = int_to_ptr.vmem [resolvable:$true] %s100_s29 }
  0x16   :  { %103 = dma.hbm_to_vmem [thread:$0]  %s99_s3, 16, %s101_s29, [#allocation12]  }
  0x17   :  { %584 = dma.done.wait [#allocation3], 16  }
  0x18   :  { %585 = vsyncadd [#allocation3], 4294967280 }
  0x19   :  { %586 = dma.done.wait [#allocation6], 528  }
  0x1a   :  { %587 = vsyncadd [#allocation6], 4294966768 }
  0x1b   :  { %588 = dma.done.wait [#allocation9], 32  }
  0x1c   :  { %589 = vsyncadd [#allocation9], 4294967264 }
  0x1d   :  { %590 = dma.done.wait [#allocation12], 32  }
  0x1e   :  { %591 = vsyncadd [#allocation12], 4294967264  ;;  %vm139_vm0 = vcmask 261120   ;;  %v136_v0 = vld [vmem:[%s751_s0] sm:$0xff]  ;;  %v603_v2 = vmov 32.0   ;;  %v179_v15 = vld [vmem:[#allocation7 + $0x10] sm:$0xff] }
  0x1f   :  { %v140_v1 = vsel %vm139_vm0, %v136_v0, 0.0  ;;  %380 = vrcp.f32 %v603_v2  ;;  %v180_v14 = vld [vmem:[#allocation7 + $0x18] sm:$0xff]  ;;  %v178_v16 = vld [vmem:[#allocation7 + $0x8] sm:$0xff]  ;;  %v177_v17 = vld [vmem:[#allocation7] sm:$0xff]  ;;  %vm219_vm5 = vcmask 523264   ;;  %v604_v46 = vmov 64.0  }
  0x20   :  { %141 = vadd.xlane.f32.xlu0 %v140_v1  ;;  %200 = vmatpush.msra.mxu0 %v180_v14  ;;  %v373_v27 = vld [vmem:[#allocation2] ss:$0 sm:$0xff]  ;;  %v374_v30 = vld [vmem:[#allocation5] ss:$0 sm:$0xff]  ;;  %v375_v33 = vld [vmem:[#allocation8] ss:$0 sm:$0xff] }
  0x21   :  { %v264_v58 = vld [vmem:[%s758_s7 + $0x38] sm:$0xff]  ;;  %v263_v59 = vld [vmem:[%s758_s7 + $0x30] sm:$0xff]  ;;  %v262_v60 = vld [vmem:[%s758_s7 + $0x28] sm:$0xff]  ;;  %s345_s17 = sshll.u32 %s762_s11, 4  ;;  %vm336_vm10 = vcmask 64512   ;;  %s346_s17 = int_to_ptr.hbm [resolvable:$true] %s345_s17 }
  0x22   :  { %201 = vmatpush.msra.mxu0 %v179_v15  ;;  %280 = vmatpush.msra.mxu1 %v264_v58  ;;  %v261_v61 = vld [vmem:[%s758_s7 + $0x20] sm:$0xff]  ;;  %v260_v62 = vld [vmem:[%s758_s7 + $0x18] sm:$0xff]  ;;  %v259_v63 = vld [vmem:[%s758_s7 + $0x10] sm:$0xff] }
  0x23   :  { %v257_v1 = vld [vmem:[%s758_s7] sm:$0xff]  ;;  %v377_v14 = vld [vmem:[#allocation11] ss:$0 sm:$0xff] }
  0x24   :  { %202 = vmatpush.msra.mxu0 %v178_v16  ;;  %281 = vmatpush.msra.mxu1 %v263_v59 }
  0x25   :  { %v381_v3 = vpop.eup %380 }
  0x26   :  { %v144_v4 = vmul.f32 32.0, %v381_v3  ;;  %vm148_vm1 = vweird.f32 %v381_v3  ;;  %203 = vmatpush.msra.mxu0 %v177_v17  ;;  %282 = vmatpush.msra.mxu1 %v262_v60  ;;  %v308_v17 = vld [vmem:[%s760_s9 + $0x38] sm:$0xff] }
  0x27   :  { %324 = vmatpush.msra.mxu2 %v308_v17 }
  0x28   :  { %v145_v5 = vsub.f32 1.0, %v144_v4  ;;  %283 = vmatpush.msra.mxu1 %v261_v61 }
  0x2a   :  { %v146_v6 = vmul.f32 %v381_v3, %v145_v5  ;;  %284 = vmatpush.msra.mxu1 %v260_v62 }
  0x2c   :  { %v147_v7 = vadd.f32 %v381_v3, %v146_v6  ;;  %285 = vmatpush.msra.mxu1 %v259_v63 }
  0x2e   :  { %v149_v8 = vsel %vm148_vm1, %v381_v3, %v147_v7 }
  0x93   :  { %v142_v9 = vpop.xlane.xlu0 %141 }
  0x94   :  { %v150_v10 = vmul.f32 %v149_v8, %v142_v9 }
  0x96   :  { %v151_v11 = vsub.f32 %v136_v0, %v150_v10  ;;  %v258_v0 = vld [vmem:[%s758_s7 + $0x8] sm:$0xff] }
  0x97   :  { %286 = vmatpush.msra.mxu1 %v258_v0 }
  0x98   :  { %v152_v12 = vmul.f32 %v151_v11, %v151_v11 }
  0x99   :  { %287 = vmatpush.msra.mxu1 %v257_v1 }
  0x9a   :  { %v153_v13 = vsel %vm139_vm0, %v152_v12, 0.0 }
  0x9b   :  { %154 = vadd.xlane.f32.xlu0 %v153_v13 }
 0x10e   :  { %v155_v18 = vpop.xlane.xlu0 %154 }
 0x10f   :  { %v156_v19 = vmul.f32 %v155_v18, %v149_v8  ;;  %v307_v18 = vld [vmem:[%s760_s9 + $0x30] sm:$0xff] }
 0x110   :  { %325 = vmatpush.msra.mxu2 %v307_v18 }
 0x111   :  { %v157_v20 = vadd.f32 1e-05, %v156_v19  ;;  %v306_v19 = vld [vmem:[%s760_s9 + $0x28] sm:$0xff] }
 0x112   :  { %326 = vmatpush.msra.mxu2 %v306_v19 }
 0x113   :  { %382 = vrsqrt.f32 %v157_v20  ;;  %vm164_vm3 = vweird.f32 %v157_v20 }
 0x119   :  { %v383_v21 = vpop.eup %382 }
 0x11a   :  { %v159_v22 = vmul.f32 %v383_v21, %v157_v20  ;;  %vm165_vm2 = vweird.f32 %v383_v21  ;;  %v305_v20 = vld [vmem:[%s760_s9 + $0x20] sm:$0xff] }
 0x11b   :  { %vm166_vm4 = vmor %vm164_vm3, %vm165_vm2  ;;  %327 = vmatpush.msra.mxu2 %v305_v20 }
 0x11c   :  { %v160_v23 = vmul.f32 %v383_v21, %v159_v22  ;;  %v303_v22 = vld [vmem:[%s760_s9 + $0x10] sm:$0xff] }
 0x11e   :  { %v161_v24 = vmul.f32 0.5, %v160_v23  ;;  %v302_v23 = vld [vmem:[%s760_s9 + $0x8] sm:$0xff] }
 0x120   :  { %v162_v25 = vsub.f32 1.5, %v161_v24  ;;  %v301_v24 = vld [vmem:[%s760_s9] sm:$0xff] }
 0x122   :  { %v163_v26 = vmul.f32 %v383_v21, %v162_v25  ;;  %v378_v25 = vld [vmem:[#allocation13] ss:$0 sm:$0xff] }
 0x124   :  { %v167_v28 = vsel %vm166_vm4, %v383_v21, %v163_v26  ;;  %v304_v21 = vld [vmem:[%s760_s9 + $0x18] sm:$0xff]  ;;  %s605_s9 = smov [#allocation14]  }
 0x125   :  { %v168_v29 = vmul.f32 %v167_v28, %v151_v11  ;;  %v376_v11 = vld [vmem:[#allocation10] ss:$0 sm:$0xff]  ;;  %328 = vmatpush.msra.mxu2 %v304_v21  ;;  %s343_s4 = sshll.u32 %s605_s9, 4  ;;  %s344_s4 = int_to_ptr.vmem [resolvable:$true] %s343_s4 }
 0x127   :  { %v172_v31 = vmul.f32 %v373_v27, %v168_v29  ;;  %329 = vmatpush.msra.mxu2 %v303_v22 }
 0x129   :  { %v176_v32 = vadd.f32 %v374_v30, %v172_v31  ;;  %330 = vmatpush.msra.mxu2 %v302_v23 }
 0x12b   :  { %358 = vmatmul.msk.f32.vlgmr.msra.gmra.mxu0 %vm139_vm0, %v176_v32  ;;  %331 = vmatpush.msra.mxu2 %v301_v24 }
 0x1a8   :  { %v205_v34 = vpop.f32.mrf.mxu0 }
 0x1a9   :  { %v206_v35 = vadd.f32 %v375_v33, %v205_v34 }
 0x1ab   :  { %v208_v36 = vmul.f32 %v206_v35, %v206_v35  ;;  %v213_v42 = vmul.f32 0.5, %v206_v35 }
 0x1ad   :  { %v209_v37 = vmul.f32 %v208_v36, %v206_v35 }
 0x1af   :  { %v210_v38 = vmul.f32 0.044715, %v209_v37  ;;  %v379_v37 = vld [vmem:[%s761_s10] ss:$0 sm:$0xff] }
 0x1b1   :  { %v211_v39 = vadd.f32 %v210_v38, %v206_v35 }
 0x1b3   :  { %v212_v40 = vmul.f32 0.7978846, %v211_v39 }
 0x1b5   :  { %384 = vtanh.f32 %v212_v40 }
 0x1b6   :  { %386 = vrcp.f32 %v604_v46 }
 0x1bb   :  { %v385_v41 = vpop.eup %384 }
 0x1bc   :  { %v215_v43 = vadd.f32 1.0, %v385_v41  ;;  %v387_v47 = vpop.eup %386 }
 0x1bd   :  { %v224_v48 = vmul.f32 64.0, %v387_v47  ;;  %vm228_vm6 = vweird.f32 %v387_v47 }
 0x1be   :  { %v216_v44 = vmul.f32 %v215_v43, %v213_v42 }
 0x1bf   :  { %v225_v49 = vsub.f32 1.0, %v224_v48 }
 0x1c0   :  { %v220_v45 = vsel %vm219_vm5, %v216_v44, 0.0 }
 0x1c1   :  { %221 = vadd.xlane.f32.xlu1 %v220_v45  ;;  %v226_v50 = vmul.f32 %v387_v47, %v225_v49 }
 0x1c3   :  { %v227_v51 = vadd.f32 %v387_v47, %v226_v50 }
 0x1c5   :  { %v229_v52 = vsel %vm228_vm6, %v387_v47, %v227_v51 }
 0x234   :  { %v222_v53 = vpop.xlane.xlu1 %221 }
 0x235   :  { %v230_v54 = vmul.f32 %v229_v52, %v222_v53 }
 0x237   :  { %v231_v55 = vsub.f32 %v216_v44, %v230_v54 }
 0x239   :  { %v232_v56 = vmul.f32 %v231_v55, %v231_v55 }
 0x23b   :  { %v233_v57 = vsel %vm219_vm5, %v232_v56, 0.0 }
 0x23c   :  { %234 = vadd.xlane.f32.xlu1 %v233_v57 }
 0x2af   :  { %v235_v2 = vpop.xlane.xlu1 %234 }
 0x2b0   :  { %v236_v3 = vmul.f32 %v235_v2, %v229_v52 }
 0x2b2   :  { %v237_v4 = vadd.f32 1e-05, %v236_v3 }
 0x2b4   :  { %388 = vrsqrt.f32 %v237_v4  ;;  %vm244_vm8 = vweird.f32 %v237_v4 }
 0x2ba   :  { %v389_v5 = vpop.eup %388 }
 0x2bb   :  { %v239_v6 = vmul.f32 %v389_v5, %v237_v4  ;;  %vm245_vm7 = vweird.f32 %v389_v5 }
 0x2bc   :  { %vm246_vm9 = vmor %vm244_vm8, %vm245_vm7 }
 0x2bd   :  { %v240_v7 = vmul.f32 %v389_v5, %v239_v6 }
 0x2bf   :  { %v241_v8 = vmul.f32 0.5, %v240_v7 }
 0x2c1   :  { %v242_v9 = vsub.f32 1.5, %v241_v8 }
 0x2c3   :  { %v243_v10 = vmul.f32 %v389_v5, %v242_v9 }
 0x2c5   :  { %v247_v12 = vsel %vm246_vm9, %v389_v5, %v243_v10 }
 0x2c6   :  { %v248_v13 = vmul.f32 %v247_v12, %v231_v55 }
 0x2c8   :  { %v252_v15 = vmul.f32 %v376_v11, %v248_v13 }
 0x2ca   :  { %v256_v16 = vadd.f32 %v377_v14, %v252_v15 }
 0x2cc   :  { %359 = vmatmul.msk.f32.vlgmr.msra.gmra.mxu1 %vm219_vm5, %v256_v16 }
 0x349   :  { %v289_v26 = vpop.f32.mrf.mxu1 }
 0x34a   :  { %v290_v27 = vadd.f32 %v378_v25, %v289_v26 }
 0x34c   :  { %v292_v28 = vmul.f32 %v290_v27, %v290_v27  ;;  %v297_v34 = vmul.f32 0.5, %v290_v27 }
 0x34e   :  { %v293_v29 = vmul.f32 %v292_v28, %v290_v27 }
 0x350   :  { %v294_v30 = vmul.f32 0.044715, %v293_v29 }
 0x352   :  { %v295_v31 = vadd.f32 %v294_v30, %v290_v27 }
 0x354   :  { %v296_v32 = vmul.f32 0.7978846, %v295_v31 }
 0x356   :  { %390 = vtanh.f32 %v296_v32 }
 0x35c   :  { %v391_v33 = vpop.eup %390 }
 0x35d   :  { %v299_v35 = vadd.f32 1.0, %v391_v33 }
 0x35f   :  { %v300_v36 = vmul.f32 %v299_v35, %v297_v34 }
 0x361   :  { %360 = vmatmul.msk.f32.vlgmr.msra.gmra.mxu2 %vm219_vm5, %v300_v36 }
 0x3e4   :  { %v333_v38 = vpop.f32.mrf.mxu2 }
 0x3e5   :  { %v334_v39 = vadd.f32 %v379_v37, %v333_v38 }
 0x3e7   :  { %337 = vst.msk [vmem:[#allocation14] sm:$0xff] %vm336_vm10, %v334_v39 }
 0x3e8   :  { %348 = dma.vmem_to_hbm [thread:$0]  %s344_s4, 128, %s346_s17, [#allocation4]  }
 0x3e9   :  { %592 = dma.done.wait [#allocation4], 128  }
 0x3ea   :  { %593 = vsyncadd [#allocation4], 4294967168 }
 0x3eb   :  { %353 = vsyncpa [#allocation3], 1 }
 0x3ec   :  { %354 = vsyncpa [#allocation6], 1 }
 0x3ed   :  { %355 = vsyncpa [#allocation9], 1 }
 0x3ee   :  { %356 = vsyncpa [#allocation12], 1 }
 0x3ef   :  { %357 = vsyncpa [#allocation4], 1 }

</bundles_post_ra>
